<compile_context>
chip_gen: v7x
topology: tpu7x:2x2x1
jax: 0.10.0
libtpu: 0.0.40
codegen_flags: <defaults>
</compile_context>

<pallas_src>
import jax
import jax.numpy as jnp
import numpy as np
from jax.experimental import pallas as pl
from jax.experimental.pallas import tpu as pltpu

FEATURE_SIZE = 32      # feature_size
NUM_DOCS = 256         # docEmbed rows
NUM_USERS = 64         # userEmbed rows
SLATE_SIZE = 8         # slate_size (unused by the concrete paths)
BATCH = 8              # query batch for get_recommended_item
EPS = 1e-12            # F.normalize eps


# ----------------------------------------------------------------------------
# Kernel 1: row-wise L2 normalization  (== F.normalize(w, p=2, dim=1, eps=1e-12))
# Single block: each table is tiny (<= 32 KiB), so no tiling / grid iteration.
# rsqrt(max(sumsq, eps^2)) == 1 / max(||x||, eps)  (sqrt is monotone), and rsqrt
# runs on the EUP slot instead of a full-width VALU divide.
# ----------------------------------------------------------------------------
def l2_normalize_kernel(x_ref, o_ref):
    x = x_ref[...].astype(jnp.float32)
    sumsq = jnp.sum(x * x, axis=-1, keepdims=True)
    inv_norm = jax.lax.rsqrt(jnp.maximum(sumsq, EPS * EPS))
    o_ref[...] = (x * inv_norm).astype(o_ref.dtype)


def l2_normalize(x):
    n, f = x.shape
    return pl.pallas_call(
        l2_normalize_kernel,
        out_shape=jax.ShapeDtypeStruct((n, f), x.dtype),
        grid_spec=pltpu.PrefetchScalarGridSpec(
            num_scalar_prefetch=0,
            grid=(1,),
            in_specs=[pl.BlockSpec((n, f), lambda i: (0, 0))],
            out_specs=pl.BlockSpec((n, f), lambda i: (0, 0)),
        ),
        compiler_params=pltpu.CompilerParams(dimension_semantics=("arbitrary",)),
    )(x)


# ----------------------------------------------------------------------------
# Kernel 2: get_recommended_item
#   p = embeddings @ docEmbed.T ; indices = argmax(p, dim=1)
# Doc table arrives pre-transposed as [F, N] so the MXU sees [B,F]@[F,N] directly
# (lane-dense N=256 RHS / scores), and the whole problem is one grid step.
# ----------------------------------------------------------------------------
def rank_argmax_kernel(q_ref, dT_ref, idx_ref):
    # [B, F] @ [F, N] -> [B, N] f32 scores on the MXU; argmax over lanes (XLU).
    scores = jnp.dot(q_ref[...], dT_ref[...], preferred_element_type=jnp.float32)
    idx_ref[...] = jnp.argmax(scores, axis=-1).astype(jnp.int32)[:, None]


def get_recommended_item(query_emb, doc_emb_t):
    """query_emb: [B, F] f32, doc_emb_t: [F, N] f32 (normalized, transposed) -> [B] i32."""
    b, f = query_emb.shape
    f2, n = doc_emb_t.shape
    assert f == f2
    idx = pl.pallas_call(
        rank_argmax_kernel,
        out_shape=jax.ShapeDtypeStruct((b, 1), jnp.int32),
        grid_spec=pltpu.PrefetchScalarGridSpec(
            num_scalar_prefetch=0,
            grid=(1,),
            in_specs=[
                pl.BlockSpec((b, f), lambda i: (0, 0)),   # queries (full block)
                pl.BlockSpec((f, n), lambda i: (0, 0)),   # doc table, [F, N], lane dim = N
            ],
            out_specs=pl.BlockSpec((b, 1), lambda i: (0, 0)),
        ),
        compiler_params=pltpu.CompilerParams(dimension_semantics=("arbitrary",)),
    )(query_emb, doc_emb_t)
    return idx[:, 0]


# ----------------------------------------------------------------------------
# RankModel equivalent (parameter setup + hot ranking path in Pallas)
# ----------------------------------------------------------------------------
class RankModelPallas:
    def __init__(self, doc_weight, user_weight, slate_size, feature_size):
        assert doc_weight.shape[1] == feature_size
        assert user_weight.shape[1] == feature_size
        self.slate_size = slate_size
        self.feature_size = feature_size
        # docEmbed / userEmbed weights = L2-normalized pretrained tables (Pallas kernel)
        self.doc_embed = l2_normalize(doc_weight)     # [N, F], matches docEmbed.weight
        self.user_embed = l2_normalize(user_weight)   # [M, F], matches userEmbed.weight
        # One-time layout prep: store the doc table transposed so the ranking kernel's
        # RHS is [F, N] with N on the lane dimension (no in-kernel transpose).
        self.doc_embed_t = jnp.transpose(self.doc_embed)  # [F, N]

    def get_recommended_item(self, embeddings):
        return get_recommended_item(embeddings, self.doc_embed_t)

    # TODO(synk): forward()/point_forward()/recommend() raise NotImplemented in the
    #             reference PyTorch module; nothing concrete to implement.


if __name__ == "__main__":
    key = jax.random.PRNGKey(0)
    k_doc, k_usr, k_q = jax.random.split(key, 3)

    doc_weight = jax.random.normal(k_doc, (NUM_DOCS, FEATURE_SIZE), dtype=jnp.float32)
    user_weight = jax.random.normal(k_usr, (NUM_USERS, FEATURE_SIZE), dtype=jnp.float32)
    query_emb = jax.random.normal(k_q, (BATCH, FEATURE_SIZE), dtype=jnp.float32)

    model = RankModelPallas(doc_weight, user_weight, SLATE_SIZE, FEATURE_SIZE)

    indices = model.get_recommended_item(query_emb)
    indices = jax.block_until_ready(indices)

    # Reference check (plain JAX) against the Pallas kernels.
    doc_norm_ref = doc_weight / jnp.maximum(
        jnp.linalg.norm(doc_weight, axis=1, keepdims=True), EPS)
    user_norm_ref = user_weight / jnp.maximum(
        jnp.linalg.norm(user_weight, axis=1, keepdims=True), EPS)
    p_ref = query_emb @ doc_norm_ref.T
    idx_ref = jnp.argmax(p_ref, axis=1).astype(jnp.int32)

    np.testing.assert_allclose(np.asarray(model.doc_embed), np.asarray(doc_norm_ref),
                               rtol=1e-5, atol=1e-5)
    np.testing.assert_allclose(np.asarray(model.user_embed), np.asarray(user_norm_ref),
                               rtol=1e-5, atol=1e-5)
    np.testing.assert_array_equal(np.asarray(indices), np.asarray(idx_ref))

    print("KERNEL_OK")
</pallas_src>

<mosaic_0001>
module attributes {stable_mosaic.version = 11 : i64} {
  func.func @l2_normalize_kernel(%arg0: i32, %arg1: memref<256x32xf32, #tpu.memory_space<vmem>>, %arg2: memref<256x32xf32, #tpu.memory_space<vmem>>) attributes {dimension_semantics = [#tpu.dimension_semantics<arbitrary>], iteration_bounds = array<i64: 1>, scalar_prefetch = 0 : i64, scratch_operands = 0 : i64, tpu.core_type = #tpu.core_type<tc>, window_params = [{pipeline_mode = #tpu.pipeline_mode<synchronous>, transform_indices = @transform_0, window_bounds = array<i64: 256, 32>}, {pipeline_mode = #tpu.pipeline_mode<synchronous>, transform_indices = @transform_1, window_bounds = array<i64: 256, 32>}]} {
    %c0 = arith.constant 0 : index
    %c0_0 = arith.constant 0 : index
    %0 = vector.load %arg1[%c0, %c0_0] : memref<256x32xf32, #tpu.memory_space<vmem>>, vector<256x32xf32>
    %1 = arith.mulf %0, %0 : vector<256x32xf32>
    %cst = arith.constant dense<0.000000e+00> : vector<256xf32>
    %2 = vector.multi_reduction <add>, %1, %cst [1] : vector<256x32xf32> to vector<256xf32>
    %3 = vector.shape_cast %2 : vector<256xf32> to vector<256x1xf32>
    %cst_1 = arith.constant 1.000000e-24 : f32
    %4 = vector.broadcast %cst_1 : f32 to vector<256x1xf32>
    %5 = arith.maximumf %3, %4 : vector<256x1xf32>
    %6 = math.rsqrt %5 : vector<256x1xf32>
    %7 = vector.broadcast %6 : vector<256x1xf32> to vector<256x32xf32>
    %8 = arith.mulf %0, %7 : vector<256x32xf32>
    %c0_2 = arith.constant 0 : index
    %c0_3 = arith.constant 0 : index
    %9 = vector.load %arg2[%c0_2, %c0_3] : memref<256x32xf32, #tpu.memory_space<vmem>>, vector<256x32xf32>
    tpu.vector_store %arg2[%c0_2, %c0_3], %8 {strides = array<i32>} : memref<256x32xf32, #tpu.memory_space<vmem>>, vector<256x32xf32>,
    return
  }
  func.func @transform_0(%arg0: i32) -> (i32, i32) {
    %c0_i32 = arith.constant 0 : i32
    %c0_i32_0 = arith.constant 0 : i32
    %c0_i32_1 = arith.constant 0 : i32
    return %c0_i32, %c0_i32_0 : i32, i32
  }
  func.func @transform_1(%arg0: i32) -> (i32, i32) {
    %c0_i32 = arith.constant 0 : i32
    %c0_i32_0 = arith.constant 0 : i32
    %c0_i32_1 = arith.constant 0 : i32
    return %c0_i32, %c0_i32_0 : i32, i32
  }
}

</mosaic_0001>

<bundles_post_ra>
// kernel: tpu_custom_call.1
= control target key start
LH: loop header
LB: loop body
LE: loop exit
PB: predicated region body
PF: predicated region fallthrough
CT: control target
= control target key end

     0   :  { %vm72_vm0 = vcmask 261120   ;;  %s791_s0 = inlined_call_operand.vmem [shape: f32[256,32], index: 0, kind: input, shape index: {}]   ;;  %s792_s1 = inlined_call_operand.vmem [shape: f32[256,32], index: 1, kind: output, shape index: {}]  }
   0x1   :  { %v378_v0 = vld [vmem:[%s791_s0 + $0x10] sm:$0xff]  ;;  %v383_v1 = vld [vmem:[%s791_s0] sm:$0xff]  ;;  %v388_v2 = vld [vmem:[%s791_s0 + $0x18] sm:$0xff] }
   0x2   :  { %v42_v3 = vmul.f32 %v378_v0, %v378_v0  ;;  %v40_v4 = vmul.f32 %v383_v1, %v383_v1  ;;  %v43_v5 = vmul.f32 %v388_v2, %v388_v2  ;;  %v399_v6 = vld [vmem:[%s791_s0 + $0x8] sm:$0xff]  ;;  %v411_v9 = vld [vmem:[%s791_s0 + $0x20] sm:$0xff]  ;;  %v424_v16 = vld [vmem:[%s791_s0 + $0x38] sm:$0xff] }
   0x3   :  { %v41_v7 = vmul.f32 %v399_v6, %v399_v6  ;;  %v406_v8 = vld [vmem:[%s791_s0 + $0x28] sm:$0xff]  ;;  %v44_v15 = vmul.f32 %v411_v9, %v411_v9  ;;  %v429_v17 = vld [vmem:[%s791_s0 + $0x30] sm:$0xff]  ;;  %v47_v20 = vmul.f32 %v424_v16, %v424_v16  ;;  %v445_v23 = vld [vmem:[%s791_s0 + $0x40] sm:$0xff] }
   0x4   :  { %v79_v10 = vsel %vm72_vm0, %v42_v3, 0.0  ;;  %v73_v11 = vsel %vm72_vm0, %v40_v4, 0.0  ;;  %v82_v12 = vsel %vm72_vm0, %v43_v5, 0.0  ;;  %v45_v14 = vmul.f32 %v406_v8, %v406_v8  ;;  %v440_v22 = vld [vmem:[%s791_s0 + $0x48] sm:$0xff]  ;;  %v456_v28 = vld [vmem:[%s791_s0 + $0x58] sm:$0xff]  ;;  %v461_v29 = vld [vmem:[%s791_s0 + $0x50] sm:$0xff] }
   0x5   :  { %80 = vadd.xlane.f32.xlu1 %v79_v10  ;;  %74 = vadd.xlane.f32.xlu0 %v73_v11  ;;  %v76_v13 = vsel %vm72_vm0, %v41_v7, 0.0  ;;  %v85_v19 = vsel %vm72_vm0, %v44_v15, 0.0  ;;  %v46_v21 = vmul.f32 %v429_v17, %v429_v17  ;;  %v94_v24 = vsel %vm72_vm0, %v47_v20, 0.0  ;;  %v472_v34 = vld [vmem:[%s791_s0 + $0x68] sm:$0xff]  ;;  %v477_v35 = vld [vmem:[%s791_s0 + $0x60] sm:$0xff]  ;;  %v488_v40 = vld [vmem:[%s791_s0 + $0x78] sm:$0xff] }
   0x6   :  { %v88_v18 = vsel %vm72_vm0, %v45_v14, 0.0  ;;  %v49_v26 = vmul.f32 %v440_v22, %v440_v22  ;;  %v48_v27 = vmul.f32 %v445_v23, %v445_v23  ;;  %v51_v32 = vmul.f32 %v456_v28, %v456_v28  ;;  %v493_v41 = vld [vmem:[%s791_s0 + $0x70] sm:$0xff]  ;;  %v504_v46 = vld [vmem:[%s791_s0 + $0x88] sm:$0xff]  ;;  %v509_v47 = vld [vmem:[%s791_s0 + $0x80] sm:$0xff] }
   0x7   :  { %v91_v25 = vsel %vm72_vm0, %v46_v21, 0.0  ;;  %v50_v33 = vmul.f32 %v461_v29, %v461_v29  ;;  %v53_v38 = vmul.f32 %v472_v34, %v472_v34  ;;  %v52_v39 = vmul.f32 %v477_v35, %v477_v35  ;;  %v520_v52 = vld [vmem:[%s791_s0 + $0x98] sm:$0xff]  ;;  %v525_v53 = vld [vmem:[%s791_s0 + $0x90] sm:$0xff]  ;;  %v536_v58 = vld [vmem:[%s791_s0 + $0xa8] sm:$0xff] }
   0x8   :  { %v100_v30 = vsel %vm72_vm0, %v49_v26, 0.0  ;;  %v97_v31 = vsel %vm72_vm0, %v48_v27, 0.0  ;;  %v106_v36 = vsel %vm72_vm0, %v51_v32, 0.0  ;;  %v55_v44 = vmul.f32 %v488_v40, %v488_v40  ;;  %v541_v59 = vld [vmem:[%s791_s0 + $0xa0] sm:$0xff]  ;;  %v552_v3 = vld [vmem:[%s791_s0 + $0xb8] sm:$0xff]  ;;  %v557_v4 = vld [vmem:[%s791_s0 + $0xb0] sm:$0xff] }
   0x9   :  { %83 = vadd.xlane.f32.xlu1 %v82_v12  ;;  %77 = vadd.xlane.f32.xlu0 %v76_v13  ;;  %v103_v37 = vsel %vm72_vm0, %v50_v33, 0.0  ;;  %v112_v42 = vsel %vm72_vm0, %v53_v38, 0.0  ;;  %v109_v43 = vsel %vm72_vm0, %v52_v39, 0.0  ;;  %v54_v45 = vmul.f32 %v493_v41, %v493_v41  ;;  %v568_v12 = vld [vmem:[%s791_s0 + $0xc8] sm:$0xff]  ;;  %v573_v13 = vld [vmem:[%s791_s0 + $0xc0] sm:$0xff]  ;;  %v584_v20 = vld [vmem:[%s791_s0 + $0xd8] sm:$0xff] }
   0xa   :  { %v118_v48 = vsel %vm72_vm0, %v55_v44, 0.0  ;;  %v57_v50 = vmul.f32 %v504_v46, %v504_v46  ;;  %v56_v51 = vmul.f32 %v509_v47, %v509_v47  ;;  %v59_v56 = vmul.f32 %v520_v52, %v520_v52  ;;  %v589_v21 = vld [vmem:[%s791_s0 + $0xd0] sm:$0xff]  ;;  %v616_v38 = vld [vmem:[%s791_s0 + $0xf8] sm:$0xff] }
   0xb   :  { %v115_v49 = vsel %vm72_vm0, %v54_v45, 0.0  ;;  %v58_v57 = vmul.f32 %v525_v53, %v525_v53  ;;  %v61_v62 = vmul.f32 %v536_v58, %v536_v58  ;;  %v60_v63 = vmul.f32 %v541_v59, %v541_v59  ;;  %v621_v39 = vld [vmem:[%s791_s0 + $0xf0] sm:$0xff] }
   0xc   :  { %v124_v54 = vsel %vm72_vm0, %v57_v50, 0.0  ;;  %v121_v55 = vsel %vm72_vm0, %v56_v51, 0.0  ;;  %v130_v60 = vsel %vm72_vm0, %v59_v56, 0.0  ;;  %v63_v10 = vmul.f32 %v552_v3, %v552_v3 }
   0xd   :  { %89 = vadd.xlane.f32.xlu1 %v88_v18  ;;  %86 = vadd.xlane.f32.xlu0 %v85_v19  ;;  %v127_v61 = vsel %vm72_vm0, %v58_v57, 0.0  ;;  %v136_v5 = vsel %vm72_vm0, %v61_v62, 0.0  ;;  %v133_v7 = vsel %vm72_vm0, %v60_v63, 0.0  ;;  %v62_v11 = vmul.f32 %v557_v4, %v557_v4 }
   0xe   :  { %v142_v14 = vsel %vm72_vm0, %v63_v10, 0.0  ;;  %v65_v18 = vmul.f32 %v568_v12, %v568_v12  ;;  %v64_v19 = vmul.f32 %v573_v13, %v573_v13  ;;  %v67_v26 = vmul.f32 %v584_v20, %v584_v20 }
   0xf   :  { %v139_v15 = vsel %vm72_vm0, %v62_v11, 0.0  ;;  %v66_v27 = vmul.f32 %v589_v21, %v589_v21  ;;  %v71_v44 = vmul.f32 %v616_v38, %v616_v38  ;;  %v70_v45 = vmul.f32 %v621_v39, %v621_v39 }
  0x10   :  { %v154_v32 = vsel %vm72_vm0, %v67_v26, 0.0 }
  0x11   :  { %95 = vadd.xlane.f32.xlu1 %v94_v24  ;;  %92 = vadd.xlane.f32.xlu0 %v91_v25  ;;  %v148_v24 = vsel %vm72_vm0, %v65_v18, 0.0  ;;  %v145_v25 = vsel %vm72_vm0, %v64_v19, 0.0  ;;  %v151_v33 = vsel %vm72_vm0, %v66_v27, 0.0 }
  0x15   :  { %101 = vadd.xlane.f32.xlu1 %v100_v30  ;;  %98 = vadd.xlane.f32.xlu0 %v97_v31  ;;  %v600_v30 = vld [vmem:[%s791_s0 + $0xe8] sm:$0xff]  ;;  %v605_v31 = vld [vmem:[%s791_s0 + $0xe0] sm:$0xff] }
  0x19   :  { %107 = vadd.xlane.f32.xlu1 %v106_v36  ;;  %104 = vadd.xlane.f32.xlu0 %v103_v37  ;;  %v69_v36 = vmul.f32 %v600_v30, %v600_v30  ;;  %v68_v37 = vmul.f32 %v605_v31, %v605_v31 }
  0x1d   :  { %113 = vadd.xlane.f32.xlu1 %v112_v42  ;;  %110 = vadd.xlane.f32.xlu0 %v109_v43  ;;  %v160_v42 = vsel %vm72_vm0, %v69_v36, 0.0  ;;  %v157_v43 = vsel %vm72_vm0, %v68_v37, 0.0 }
  0x21   :  { %119 = vadd.xlane.f32.xlu1 %v118_v48  ;;  %116 = vadd.xlane.f32.xlu0 %v115_v49  ;;  %v166_v48 = vsel %vm72_vm0, %v71_v44, 0.0  ;;  %v163_v49 = vsel %vm72_vm0, %v70_v45, 0.0 }
  0x25   :  { %125 = vadd.xlane.f32.xlu1 %v124_v54  ;;  %122 = vadd.xlane.f32.xlu0 %v121_v55 }
  0x29   :  { %131 = vadd.xlane.f32.xlu1 %v130_v60  ;;  %128 = vadd.xlane.f32.xlu0 %v127_v61 }
  0x2d   :  { %137 = vadd.xlane.f32.xlu1 %v136_v5  ;;  %134 = vadd.xlane.f32.xlu0 %v133_v7 }
  0x31   :  { %143 = vadd.xlane.f32.xlu1 %v142_v14  ;;  %140 = vadd.xlane.f32.xlu0 %v139_v15 }
  0x35   :  { %149 = vadd.xlane.f32.xlu1 %v148_v24  ;;  %146 = vadd.xlane.f32.xlu0 %v145_v25 }
  0x39   :  { %155 = vadd.xlane.f32.xlu1 %v154_v32  ;;  %152 = vadd.xlane.f32.xlu0 %v151_v33 }
  0x3d   :  { %161 = vadd.xlane.f32.xlu1 %v160_v42  ;;  %158 = vadd.xlane.f32.xlu0 %v157_v43 }
  0x41   :  { %167 = vadd.xlane.f32.xlu1 %v166_v48  ;;  %164 = vadd.xlane.f32.xlu0 %v163_v49 }
  0x92   :  { %v81_v50 = vpop.xlane.xlu1 %80  ;;  %v75_v51 = vpop.xlane.xlu0 %74 }
  0x93   :  { %v171_v54 = vmax.f32 %v81_v50, 1e-24  ;;  %v169_v55 = vmax.f32 %v75_v51, 1e-24 }
  0x95   :  { %301 = vrsqrt.f32 %v171_v54 }
  0x96   :  { %303 = vrsqrt.f32 %v169_v55  ;;  %v84_v56 = vpop.xlane.xlu1 %83  ;;  %v78_v57 = vpop.xlane.xlu0 %77 }
  0x97   :  { %v172_v60 = vmax.f32 %v84_v56, 1e-24  ;;  %v170_v61 = vmax.f32 %v78_v57, 1e-24 }
  0x99   :  { %305 = vrsqrt.f32 %v172_v60 }
  0x9a   :  { %307 = vrsqrt.f32 %v170_v61  ;;  %v90_v62 = vpop.xlane.xlu1 %89  ;;  %v87_v63 = vpop.xlane.xlu0 %86 }
  0x9b   :  { %v174_v5 = vmax.f32 %v90_v62, 1e-24  ;;  %v173_v7 = vmax.f32 %v87_v63, 1e-24 }
  0x9d   :  { %309 = vrsqrt.f32 %v174_v5 }
  0x9e   :  { %311 = vrsqrt.f32 %v173_v7  ;;  %v96_v10 = vpop.xlane.xlu1 %95  ;;  %v93_v11 = vpop.xlane.xlu0 %92 }
  0x9f   :  { %v302_v14 = vpop.eup %301  ;;  %v176_v15 = vmax.f32 %v96_v10, 1e-24  ;;  %v175_v18 = vmax.f32 %v93_v11, 1e-24 }
  0xa0   :  { %v304_v19 = vpop.eup %303  ;;  %v235_v24 = vmul.f32 %v302_v14, %v378_v0 }
  0xa1   :  { %v233_v25 = vmul.f32 %v304_v19, %v383_v1  ;;  %313 = vrsqrt.f32 %v176_v15 }
  0xa2   :  { %267 = vst.msk [vmem:[%s792_s1 + $0x10] sm:$0xff] %vm72_vm0, %v235_v24  ;;  %315 = vrsqrt.f32 %v175_v18  ;;  %v102_v26 = vpop.xlane.xlu1 %101  ;;  %v99_v27 = vpop.xlane.xlu0 %98 }
  0xa3   :  { %v306_v32 = vpop.eup %305  ;;  %265 = vst.msk [vmem:[%s792_s1] sm:$0xff] %vm72_vm0, %v233_v25  ;;  %v178_v33 = vmax.f32 %v102_v26, 1e-24  ;;  %v177_v36 = vmax.f32 %v99_v27, 1e-24 }
  0xa4   :  { %v308_v0 = vpop.eup %307  ;;  %v236_v1 = vmul.f32 %v306_v32, %v388_v2 }
  0xa5   :  { %v234_v37 = vmul.f32 %v308_v0, %v399_v6  ;;  %317 = vrsqrt.f32 %v178_v33 }
  0xa6   :  { %268 = vst.msk [vmem:[%s792_s1 + $0x18] sm:$0xff] %vm72_vm0, %v236_v1  ;;  %319 = vrsqrt.f32 %v177_v36  ;;  %v108_v42 = vpop.xlane.xlu1 %107  ;;  %v105_v43 = vpop.xlane.xlu0 %104 }
  0xa7   :  { %v310_v44 = vpop.eup %309  ;;  %266 = vst.msk [vmem:[%s792_s1 + $0x8] sm:$0xff] %vm72_vm0, %v234_v37  ;;  %v180_v45 = vmax.f32 %v108_v42, 1e-24  ;;  %v179_v48 = vmax.f32 %v105_v43, 1e-24 }
  0xa8   :  { %v312_v2 = vpop.eup %311  ;;  %v238_v6 = vmul.f32 %v310_v44, %v406_v8 }
  0xa9   :  { %v237_v49 = vmul.f32 %v312_v2, %v411_v9  ;;  %321 = vrsqrt.f32 %v180_v45 }
  0xaa   :  { %270 = vst.msk [vmem:[%s792_s1 + $0x28] sm:$0xff] %vm72_vm0, %v238_v6  ;;  %323 = vrsqrt.f32 %v179_v48  ;;  %v114_v50 = vpop.xlane.xlu1 %113  ;;  %v111_v51 = vpop.xlane.xlu0 %110 }
  0xab   :  { %v314_v54 = vpop.eup %313  ;;  %269 = vst.msk [vmem:[%s792_s1 + $0x20] sm:$0xff] %vm72_vm0, %v237_v49  ;;  %v182_v55 = vmax.f32 %v114_v50, 1e-24  ;;  %v181_v56 = vmax.f32 %v111_v51, 1e-24 }
  0xac   :  { %v316_v8 = vpop.eup %315  ;;  %v240_v9 = vmul.f32 %v314_v54, %v424_v16 }
  0xad   :  { %v239_v57 = vmul.f32 %v316_v8, %v429_v17  ;;  %325 = vrsqrt.f32 %v182_v55 }
  0xae   :  { %272 = vst.msk [vmem:[%s792_s1 + $0x38] sm:$0xff] %vm72_vm0, %v240_v9  ;;  %327 = vrsqrt.f32 %v181_v56  ;;  %v120_v60 = vpop.xlane.xlu1 %119  ;;  %v117_v61 = vpop.xlane.xlu0 %116 }
  0xaf   :  { %v318_v62 = vpop.eup %317  ;;  %271 = vst.msk [vmem:[%s792_s1 + $0x30] sm:$0xff] %vm72_vm0, %v239_v57  ;;  %v184_v63 = vmax.f32 %v120_v60, 1e-24  ;;  %v183_v5 = vmax.f32 %v117_v61, 1e-24 }
  0xb0   :  { %v320_v16 = vpop.eup %319  ;;  %v242_v17 = vmul.f32 %v318_v62, %v440_v22 }
  0xb1   :  { %v241_v7 = vmul.f32 %v320_v16, %v445_v23  ;;  %329 = vrsqrt.f32 %v184_v63 }
  0xb2   :  { %274 = vst.msk [vmem:[%s792_s1 + $0x48] sm:$0xff] %vm72_vm0, %v242_v17  ;;  %331 = vrsqrt.f32 %v183_v5  ;;  %v126_v10 = vpop.xlane.xlu1 %125  ;;  %v123_v11 = vpop.xlane.xlu0 %122 }
  0xb3   :  { %v322_v14 = vpop.eup %321  ;;  %273 = vst.msk [vmem:[%s792_s1 + $0x40] sm:$0xff] %vm72_vm0, %v241_v7  ;;  %v186_v15 = vmax.f32 %v126_v10, 1e-24  ;;  %v185_v18 = vmax.f32 %v123_v11, 1e-24 }
  0xb4   :  { %v324_v22 = vpop.eup %323  ;;  %v244_v23 = vmul.f32 %v322_v14, %v456_v28 }
  0xb5   :  { %v243_v19 = vmul.f32 %v324_v22, %v461_v29  ;;  %333 = vrsqrt.f32 %v186_v15 }
  0xb6   :  { %276 = vst.msk [vmem:[%s792_s1 + $0x58] sm:$0xff] %vm72_vm0, %v244_v23  ;;  %335 = vrsqrt.f32 %v185_v18  ;;  %v132_v24 = vpop.xlane.xlu1 %131  ;;  %v129_v25 = vpop.xlane.xlu0 %128 }
  0xb7   :  { %v326_v26 = vpop.eup %325  ;;  %275 = vst.msk [vmem:[%s792_s1 + $0x50] sm:$0xff] %vm72_vm0, %v243_v19  ;;  %v188_v27 = vmax.f32 %v132_v24, 1e-24  ;;  %v187_v32 = vmax.f32 %v129_v25, 1e-24 }
  0xb8   :  { %v328_v28 = vpop.eup %327  ;;  %v246_v29 = vmul.f32 %v326_v26, %v472_v34 }
  0xb9   :  { %v245_v33 = vmul.f32 %v328_v28, %v477_v35  ;;  %337 = vrsqrt.f32 %v188_v27 }
  0xba   :  { %278 = vst.msk [vmem:[%s792_s1 + $0x68] sm:$0xff] %vm72_vm0, %v246_v29  ;;  %339 = vrsqrt.f32 %v187_v32  ;;  %v138_v36 = vpop.xlane.xlu1 %137  ;;  %v135_v0 = vpop.xlane.xlu0 %134 }
  0xbb   :  { %v330_v1 = vpop.eup %329  ;;  %277 = vst.msk [vmem:[%s792_s1 + $0x60] sm:$0xff] %vm72_vm0, %v245_v33  ;;  %v190_v37 = vmax.f32 %v138_v36, 1e-24  ;;  %v189_v42 = vmax.f32 %v135_v0, 1e-24 }
  0xbc   :  { %v332_v34 = vpop.eup %331  ;;  %v248_v35 = vmul.f32 %v330_v1, %v488_v40 }
  0xbd   :  { %v247_v43 = vmul.f32 %v332_v34, %v493_v41  ;;  %341 = vrsqrt.f32 %v190_v37 }
  0xbe   :  { %280 = vst.msk [vmem:[%s792_s1 + $0x78] sm:$0xff] %vm72_vm0, %v248_v35  ;;  %343 = vrsqrt.f32 %v189_v42  ;;  %v144_v44 = vpop.xlane.xlu1 %143  ;;  %v141_v45 = vpop.xlane.xlu0 %140 }
  0xbf   :  { %v334_v48 = vpop.eup %333  ;;  %279 = vst.msk [vmem:[%s792_s1 + $0x70] sm:$0xff] %vm72_vm0, %v247_v43  ;;  %v192_v2 = vmax.f32 %v144_v44, 1e-24  ;;  %v191_v6 = vmax.f32 %v141_v45, 1e-24 }
  0xc0   :  { %v336_v40 = vpop.eup %335  ;;  %v250_v41 = vmul.f32 %v334_v48, %v504_v46 }
  0xc1   :  { %v249_v49 = vmul.f32 %v336_v40, %v509_v47  ;;  %345 = vrsqrt.f32 %v192_v2 }
  0xc2   :  { %282 = vst.msk [vmem:[%s792_s1 + $0x88] sm:$0xff] %vm72_vm0, %v250_v41  ;;  %347 = vrsqrt.f32 %v191_v6  ;;  %v150_v50 = vpop.xlane.xlu1 %149  ;;  %v147_v51 = vpop.xlane.xlu0 %146 }
  0xc3   :  { %v338_v54 = vpop.eup %337  ;;  %281 = vst.msk [vmem:[%s792_s1 + $0x80] sm:$0xff] %vm72_vm0, %v249_v49  ;;  %v194_v55 = vmax.f32 %v150_v50, 1e-24  ;;  %v193_v56 = vmax.f32 %v147_v51, 1e-24 }
  0xc4   :  { %v340_v46 = vpop.eup %339  ;;  %v252_v47 = vmul.f32 %v338_v54, %v520_v52 }
  0xc5   :  { %v251_v8 = vmul.f32 %v340_v46, %v525_v53  ;;  %349 = vrsqrt.f32 %v194_v55 }
  0xc6   :  { %284 = vst.msk [vmem:[%s792_s1 + $0x98] sm:$0xff] %vm72_vm0, %v252_v47  ;;  %351 = vrsqrt.f32 %v193_v56  ;;  %v156_v9 = vpop.xlane.xlu1 %155  ;;  %v153_v57 = vpop.xlane.xlu0 %152 }
  0xc7   :  { %v342_v60 = vpop.eup %341  ;;  %283 = vst.msk [vmem:[%s792_s1 + $0x90] sm:$0xff] %vm72_vm0, %v251_v8  ;;  %v196_v61 = vmax.f32 %v156_v9, 1e-24  ;;  %v195_v62 = vmax.f32 %v153_v57, 1e-24 }
  0xc8   :  { %v344_v52 = vpop.eup %343  ;;  %v254_v53 = vmul.f32 %v342_v60, %v536_v58 }
  0xc9   :  { %v253_v63 = vmul.f32 %v344_v52, %v541_v59  ;;  %353 = vrsqrt.f32 %v196_v61 }
  0xca   :  { %286 = vst.msk [vmem:[%s792_s1 + $0xa8] sm:$0xff] %vm72_vm0, %v254_v53  ;;  %355 = vrsqrt.f32 %v195_v62  ;;  %v162_v5 = vpop.xlane.xlu1 %161  ;;  %v159_v16 = vpop.xlane.xlu0 %158 }
  0xcb   :  { %v346_v17 = vpop.eup %345  ;;  %285 = vst.msk [vmem:[%s792_s1 + $0xa0] sm:$0xff] %vm72_vm0, %v253_v63  ;;  %v198_v7 = vmax.f32 %v162_v5, 1e-24  ;;  %v197_v10 = vmax.f32 %v159_v16, 1e-24 }
  0xcc   :  { %v348_v58 = vpop.eup %347  ;;  %v256_v59 = vmul.f32 %v346_v17, %v552_v3 }
  0xcd   :  { %v255_v11 = vmul.f32 %v348_v58, %v557_v4  ;;  %357 = vrsqrt.f32 %v198_v7 }
  0xce   :  { %288 = vst.msk [vmem:[%s792_s1 + $0xb8] sm:$0xff] %vm72_vm0, %v256_v59  ;;  %359 = vrsqrt.f32 %v197_v10  ;;  %v168_v14 = vpop.xlane.xlu1 %167  ;;  %v165_v15 = vpop.xlane.xlu0 %164 }
  0xcf   :  { %v350_v18 = vpop.eup %349  ;;  %287 = vst.msk [vmem:[%s792_s1 + $0xb0] sm:$0xff] %vm72_vm0, %v255_v11  ;;  %v200_v22 = vmax.f32 %v168_v14, 1e-24  ;;  %v199_v23 = vmax.f32 %v165_v15, 1e-24 }
  0xd0   :  { %v352_v3 = vpop.eup %351  ;;  %v258_v4 = vmul.f32 %v350_v18, %v568_v12 }
  0xd1   :  { %v257_v19 = vmul.f32 %v352_v3, %v573_v13  ;;  %361 = vrsqrt.f32 %v200_v22 }
  0xd2   :  { %290 = vst.msk [vmem:[%s792_s1 + $0xc8] sm:$0xff] %vm72_vm0, %v258_v4  ;;  %363 = vrsqrt.f32 %v199_v23 }
  0xd3   :  { %v354_v24 = vpop.eup %353  ;;  %289 = vst.msk [vmem:[%s792_s1 + $0xc0] sm:$0xff] %vm72_vm0, %v257_v19 }
  0xd4   :  { %v356_v25 = vpop.eup %355  ;;  %v260_v26 = vmul.f32 %v354_v24, %v584_v20 }
  0xd5   :  { %v259_v12 = vmul.f32 %v356_v25, %v589_v21 }
  0xd6   :  { %292 = vst.msk [vmem:[%s792_s1 + $0xd8] sm:$0xff] %vm72_vm0, %v260_v26 }
  0xd7   :  { %v358_v13 = vpop.eup %357  ;;  %291 = vst.msk [vmem:[%s792_s1 + $0xd0] sm:$0xff] %vm72_vm0, %v259_v12 }
  0xd8   :  { %v360_v27 = vpop.eup %359  ;;  %v262_v32 = vmul.f32 %v358_v13, %v600_v30 }
  0xd9   :  { %v261_v28 = vmul.f32 %v360_v27, %v605_v31 }
  0xda   :  { %294 = vst.msk [vmem:[%s792_s1 + $0xe8] sm:$0xff] %vm72_vm0, %v262_v32 }
  0xdb   :  { %v362_v20 = vpop.eup %361  ;;  %293 = vst.msk [vmem:[%s792_s1 + $0xe0] sm:$0xff] %vm72_vm0, %v261_v28 }
  0xdc   :  { %v364_v21 = vpop.eup %363  ;;  %v264_v29 = vmul.f32 %v362_v20, %v616_v38 }
  0xdd   :  { %v263_v33 = vmul.f32 %v364_v21, %v621_v39 }
  0xde   :  { %296 = vst.msk [vmem:[%s792_s1 + $0xf8] sm:$0xff] %vm72_vm0, %v264_v29 }
  0xdf   :  { %295 = vst.msk [vmem:[%s792_s1 + $0xf0] sm:$0xff] %vm72_vm0, %v263_v33 }

</bundles_post_ra>
